<compile_context>
chip_gen: v5e
topology: v5e:2x2
jax: 0.10.0
libtpu: 0.0.40
codegen_flags: <defaults>
</compile_context>

<pallas_src>
import functools

import jax
import jax.numpy as jnp
from jax.experimental import pallas as pl
from jax.experimental.pallas import tpu as pltpu

LANE = 128


# ----------------------------------------------------------------------------
# Fused kernel: the whole 4-layer forward in one VMEM-resident pallas_call.
# ----------------------------------------------------------------------------
def _fused_toy_kernel(x_ref, w1_ref, b1_ref, w2_ref, b2_ref,
                      w3_ref, b3_ref, w4_ref, b4_ref, o_ref):
    h = jnp.dot(x_ref[...], w1_ref[...], preferred_element_type=jnp.float32) + b1_ref[...]
    h = jnp.dot(h, w2_ref[...], preferred_element_type=jnp.float32) + b2_ref[...]
    h = jnp.dot(h, w3_ref[...], preferred_element_type=jnp.float32) + b3_ref[...]
    h = jnp.dot(h, w4_ref[...], preferred_element_type=jnp.float32) + b4_ref[...]
    o_ref[...] = h.astype(o_ref.dtype)


@functools.partial(jax.jit, static_argnames=("d_out",))
def toy_model_forward(x, prepared, *, d_out):
    """Fused forward: one kernel, all weights + intermediates resident in VMEM."""
    (w1, b1), (w2, b2), (w3, b3), (w4, b4) = prepared
    M = x.shape[0]
    n_pad = w4.shape[1]            # lane-padded final width (multiple of 128)
    operands = (x, w1, b1, w2, b2, w3, b3, w4, b4)

    # Static VMEM-budget sanity check (trace-time; all shapes are static).
    total_bytes = sum(int(a.size) * a.dtype.itemsize for a in operands) + M * n_pad * 4
    assert total_bytes < 24 * 1024 * 1024, (
        "fused path exceeds the VMEM budget; use toy_model_forward_tiled instead")

    out_padded = pl.pallas_call(
        _fused_toy_kernel,
        out_shape=jax.ShapeDtypeStruct((M, n_pad), jnp.float32),
    )(*operands)
    return out_padded[:, :d_out]


# ----------------------------------------------------------------------------
# Tiled fallback (for layers whose weights do not fit in VMEM).
# Aligned tile selection, activation slab pinned fully resident, weight
# pre-transposed, K reduction axis last + "arbitrary".
# ----------------------------------------------------------------------------
def _pick_tile(dim, candidates):
    """Largest aligned candidate that divides dim; otherwise full extent
    (only safe for small dims — pad large arrays to (8,128) multiples first)."""
    for c in candidates:
        if dim % c == 0:
            return c
    return dim


def pallas_linear_tiled(x, w_t, b2, *, tm=None, tn=None, tk=None):
    """y = x @ w_t + b2 with w_t pre-transposed to (K, N) and b2 of shape (1, N)."""
    M, K = x.shape
    K2, N = w_t.shape
    assert K == K2 and b2.shape == (1, N)

    tm = tm or _pick_tile(M, (256, 128, 64, 32, 16, 8))
    tk = tk or _pick_tile(K, (512, 256, 128))
    tn = tn or _pick_tile(N, (256, 128))
    grid = (pl.cdiv(M, tm), pl.cdiv(N, tn), pl.cdiv(K, tk))

    def kernel(x_ref, w_ref, b_ref, o_ref, acc_ref):
        k = pl.program_id(2)

        @pl.when(k == 0)
        def _():
            acc_ref[...] = jnp.zeros_like(acc_ref)

        # x slab is fully resident over K; slice the current K chunk.
        x_blk = x_ref[:, pl.ds(pl.multiple_of(k * tk, tk), tk)]
        acc_ref[...] += jnp.dot(x_blk, w_ref[...], preferred_element_type=jnp.float32)

        @pl.when(k == pl.num_programs(2) - 1)
        def _():
            o_ref[...] = (acc_ref[...] + b_ref[...]).astype(o_ref.dtype)

    return pl.pallas_call(
        kernel,
        out_shape=jax.ShapeDtypeStruct((M, N), x.dtype),
        grid_spec=pltpu.PrefetchScalarGridSpec(
            num_scalar_prefetch=0,
            grid=grid,
            in_specs=[
                # activation slab: full K, re-DMA'd only when the row block changes
                pl.BlockSpec((tm, K), lambda i, j, k: (i, 0)),
                # weight stream: the only large operand; double-buffered by Pallas
                pl.BlockSpec((tk, tn), lambda i, j, k: (k, j)),
                pl.BlockSpec((1, tn), lambda i, j, k: (0, j)),
            ],
            out_specs=pl.BlockSpec((tm, tn), lambda i, j, k: (i, j)),
            scratch_shapes=[pltpu.VMEM((tm, tn), jnp.float32)],
        ),
        compiler_params=pltpu.CompilerParams(
            dimension_semantics=("parallel", "parallel", "arbitrary")
        ),
    )(x, w_t, b2)


@functools.partial(jax.jit, static_argnames=("d_out",))
def toy_model_forward_tiled(x, prepared, *, d_out):
    h = x
    for w_t, b2 in prepared:
        h = pallas_linear_tiled(h, w_t, b2)
    return h[:, :d_out]


# ----------------------------------------------------------------------------
# Parameters: PyTorch-style init, then one-time transpose / lane-pad prep.
# ----------------------------------------------------------------------------
def init_linear_params(key, out_features, in_features, dtype=jnp.float32):
    """PyTorch nn.Linear default init: U(-1/sqrt(fan_in), 1/sqrt(fan_in))."""
    kw, kb = jax.random.split(key)
    bound = 1.0 / (in_features ** 0.5)
    w = jax.random.uniform(kw, (out_features, in_features), dtype, -bound, bound)
    b = jax.random.uniform(kb, (out_features,), dtype, -bound, bound)
    return w, b


def prepare_params(torch_params):
    """One-time (outside jit): transpose weights to (in, out), reshape biases to
    (1, out), and zero-pad the FINAL layer's output dim to a multiple of 128 so
    the kernel's output store is lane-dense."""
    prepared = []
    last = len(torch_params) - 1
    for idx, (w, b) in enumerate(torch_params):
        out_f, _ = w.shape
        w_t = jnp.asarray(w).T                  # (in, out)
        b2 = jnp.asarray(b).reshape(1, out_f)
        if idx == last and out_f % LANE != 0:
            n_pad = ((out_f + LANE - 1) // LANE) * LANE
            w_t = jnp.pad(w_t, ((0, 0), (0, n_pad - out_f)))
            b2 = jnp.pad(b2, ((0, 0), (0, n_pad - out_f)))
        prepared.append((w_t, b2))
    return tuple(prepared)


if __name__ == "__main__":
    # Small, structure-preserving shapes (original: 10000 / 10000 / 20000 / 10).
    BATCH, D_IN, D_H, D_H3, D_OUT = 8, 256, 256, 512, 10

    root = jax.random.PRNGKey(0)
    k_x, k1, k2, k3, k4 = jax.random.split(root, 5)

    x = jax.random.normal(k_x, (BATCH, D_IN), jnp.float32)
    torch_params = (
        init_linear_params(k1, D_H, D_IN),
        init_linear_params(k2, D_H, D_H),
        init_linear_params(k3, D_H3, D_H),
        init_linear_params(k4, D_OUT, D_H3),
    )
    prepared = prepare_params(torch_params)     # one-time transpose + pad

    # Primary (fused) path.
    out = toy_model_forward(x, prepared, d_out=D_OUT)
    out = jax.block_until_ready(out)
    assert out.shape == (BATCH, D_OUT), out.shape

    # Plain-JAX reference of the exact module math.
    ref = x
    for w, b in torch_params:
        ref = ref @ w.T + b
    assert jnp.allclose(out, ref, atol=1e-3, rtol=1e-3)

    # Cross-check the streamed/tiled fallback path (used when weights exceed VMEM).
    out_tiled = toy_model_forward_tiled(x, prepared, d_out=D_OUT)
    out_tiled = jax.block_until_ready(out_tiled)
    assert out_tiled.shape == (BATCH, D_OUT)
    assert jnp.allclose(out_tiled, ref, atol=1e-3, rtol=1e-3)

    print("KERNEL_OK")
</pallas_src>

<mosaic_0001>
module attributes {stable_mosaic.version = 11 : i64} {
  func.func @_fused_toy_kernel(%arg0: memref<8x256xf32, #tpu.memory_space<vmem>>, %arg1: memref<256x256xf32, #tpu.memory_space<vmem>>, %arg2: memref<1x256xf32, #tpu.memory_space<vmem>>, %arg3: memref<256x256xf32, #tpu.memory_space<vmem>>, %arg4: memref<1x256xf32, #tpu.memory_space<vmem>>, %arg5: memref<256x512xf32, #tpu.memory_space<vmem>>, %arg6: memref<1x512xf32, #tpu.memory_space<vmem>>, %arg7: memref<512x128xf32, #tpu.memory_space<vmem>>, %arg8: memref<1x128xf32, #tpu.memory_space<vmem>>, %arg9: memref<8x128xf32, #tpu.memory_space<vmem>>) attributes {dimension_semantics = [], scalar_prefetch = 0 : i64, scratch_operands = 0 : i64, tpu.core_type = #tpu.core_type<tc>} {
    %c0 = arith.constant 0 : index
    %c0_0 = arith.constant 0 : index
    %0 = vector.load %arg0[%c0, %c0_0] : memref<8x256xf32, #tpu.memory_space<vmem>>, vector<8x256xf32>
    %c0_1 = arith.constant 0 : index
    %c0_2 = arith.constant 0 : index
    %1 = vector.load %arg1[%c0_1, %c0_2] : memref<256x256xf32, #tpu.memory_space<vmem>>, vector<256x256xf32>
    %cst = arith.constant dense<0.000000e+00> : vector<8x256xf32>
    %2 = tpu.matmul %0, %1, %cst {dimension_numbers = #tpu.dot_dimension_numbers<[1], [0], [0], [1], [0, 0, 1, 1], [], []>} : vector<8x256xf32>, vector<256x256xf32>, vector<8x256xf32> -> vector<8x256xf32>
    %c0_3 = arith.constant 0 : index
    %c0_4 = arith.constant 0 : index
    %3 = vector.load %arg2[%c0_3, %c0_4] : memref<1x256xf32, #tpu.memory_space<vmem>>, vector<1x256xf32>
    %4 = vector.broadcast %3 : vector<1x256xf32> to vector<8x256xf32>
    %5 = arith.addf %2, %4 : vector<8x256xf32>
    %c0_5 = arith.constant 0 : index
    %c0_6 = arith.constant 0 : index
    %6 = vector.load %arg3[%c0_5, %c0_6] : memref<256x256xf32, #tpu.memory_space<vmem>>, vector<256x256xf32>
    %cst_7 = arith.constant dense<0.000000e+00> : vector<8x256xf32>
    %7 = tpu.matmul %5, %6, %cst_7 {dimension_numbers = #tpu.dot_dimension_numbers<[1], [0], [0], [1], [0, 0, 1, 1], [], []>} : vector<8x256xf32>, vector<256x256xf32>, vector<8x256xf32> -> vector<8x256xf32>
    %c0_8 = arith.constant 0 : index
    %c0_9 = arith.constant 0 : index
    %8 = vector.load %arg4[%c0_8, %c0_9] : memref<1x256xf32, #tpu.memory_space<vmem>>, vector<1x256xf32>
    %9 = vector.broadcast %8 : vector<1x256xf32> to vector<8x256xf32>
    %10 = arith.addf %7, %9 : vector<8x256xf32>
    %c0_10 = arith.constant 0 : index
    %c0_11 = arith.constant 0 : index
    %11 = vector.load %arg5[%c0_10, %c0_11] : memref<256x512xf32, #tpu.memory_space<vmem>>, vector<256x512xf32>
    %cst_12 = arith.constant dense<0.000000e+00> : vector<8x512xf32>
    %12 = tpu.matmul %10, %11, %cst_12 {dimension_numbers = #tpu.dot_dimension_numbers<[1], [0], [0], [1], [0, 0, 1, 1], [], []>} : vector<8x256xf32>, vector<256x512xf32>, vector<8x512xf32> -> vector<8x512xf32>
    %c0_13 = arith.constant 0 : index
    %c0_14 = arith.constant 0 : index
    %13 = vector.load %arg6[%c0_13, %c0_14] : memref<1x512xf32, #tpu.memory_space<vmem>>, vector<1x512xf32>
    %14 = vector.broadcast %13 : vector<1x512xf32> to vector<8x512xf32>
    %15 = arith.addf %12, %14 : vector<8x512xf32>
    %c0_15 = arith.constant 0 : index
    %c0_16 = arith.constant 0 : index
    %16 = vector.load %arg7[%c0_15, %c0_16] : memref<512x128xf32, #tpu.memory_space<vmem>>, vector<512x128xf32>
    %cst_17 = arith.constant dense<0.000000e+00> : vector<8x128xf32>
    %17 = tpu.matmul %15, %16, %cst_17 {dimension_numbers = #tpu.dot_dimension_numbers<[1], [0], [0], [1], [0, 0, 1, 1], [], []>} : vector<8x512xf32>, vector<512x128xf32>, vector<8x128xf32> -> vector<8x128xf32>
    %c0_18 = arith.constant 0 : index
    %c0_19 = arith.constant 0 : index
    %18 = vector.load %arg8[%c0_18, %c0_19] : memref<1x128xf32, #tpu.memory_space<vmem>>, vector<1x128xf32>
    %19 = vector.broadcast %18 : vector<1x128xf32> to vector<8x128xf32>
    %20 = arith.addf %17, %19 : vector<8x128xf32>
    %c0_20 = arith.constant 0 : index
    %c0_21 = arith.constant 0 : index
    %21 = vector.load %arg9[%c0_20, %c0_21] : memref<8x128xf32, #tpu.memory_space<vmem>>, vector<8x128xf32>
    tpu.vector_store %arg9[%c0_20, %c0_21], %20 {strides = array<i32>} : memref<8x128xf32, #tpu.memory_space<vmem>>, vector<8x128xf32>,
    return
  }
}

</mosaic_0001>

<bundles_post_ra>
// kernel: toy_model_forward.1
= control target key start
LH: loop header
LB: loop body
LE: loop exit
PB: predicated region body
PF: predicated region fallthrough
CT: control target
= control target key end

     0   :  { %14 = vsyncpa [#allocation3], 0  ;;  %s1216_s0 = inlined_call_operand.hbm [shape: f32[8,256], index: 0, kind: input, shape index: {}]   ;;  %s1217_s1 = inlined_call_operand.hbm [shape: f32[256,256], index: 1, kind: input, shape index: {}]   ;;  %s1218_s2 = inlined_call_operand.hbm [shape: f32[1,256], index: 2, kind: input, shape index: {}]   ;;  %s1219_s3 = inlined_call_operand.hbm [shape: f32[256,256], index: 3, kind: input, shape index: {}]   ;;  %s1220_s4 = inlined_call_operand.hbm [shape: f32[1,256], index: 4, kind: input, shape index: {}]   ;;  %s1221_s5 = inlined_call_operand.hbm [shape: f32[256,512], index: 5, kind: input, shape index: {}]   ;;  %s1222_s6 = inlined_call_operand.vmem [shape: f32[1,512], index: 6, kind: input, shape index: {}]   ;;  %s1223_s7 = inlined_call_operand.hbm [shape: f32[512,128], index: 7, kind: input, shape index: {}]   ;;  %s1224_s8 = inlined_call_operand.vmem [shape: f32[1,128], index: 8, kind: input, shape index: {}]   ;;  %s1225_s9 = inlined_call_operand.hbm [shape: f32[8,128], index: 9, kind: output, shape index: {}]  }
   0x1   :  { %15 = vsyncpa [#allocation6], 0 }
   0x2   :  { %16 = vsyncpa [#allocation9], 0 }
   0x3   :  { %17 = vsyncpa [#allocation12], 0  ;;  %s34_s11 = sshll.u32 %s1217_s1, 4  ;;  %s35_s11 = int_to_ptr.hbm [resolvable:$true] %s34_s11 }
   0x4   :  { %18 = vsyncpa [#allocation4], 0  ;;  %s1122_s12 = smov [#allocation5]   ;;  %s58_s16 = sshll.u32 %s1219_s3, 4  ;;  %s59_s16 = int_to_ptr.hbm [resolvable:$true] %s58_s16 }
   0x5   :  { %s36_s13 = sshll.u32 %s1122_s12, 4  ;;  %s1123_s17 = smov 256   ;;  %s37_s13 = int_to_ptr.vmem [resolvable:$true] %s36_s13 }
   0x6   :  { %s1124_s18 = smov 16   ;;  %s1125_s19 = smov [#allocation8]  }
   0x7   :  { %42 = dma.hbm_to_vmem [thread:$0]  %s35_s11, 8192, %s37_s13, [#allocation6], %s1123_s17, %s1123_s17, %s1124_s18  }
   0x8   :  { %s60_s20 = sshll.u32 %s1125_s19, 4  ;;  %s82_s23 = sshll.u32 %s1221_s5, 4  ;;  %s61_s20 = int_to_ptr.vmem [resolvable:$true] %s60_s20  ;;  %s83_s23 = int_to_ptr.hbm [resolvable:$true] %s82_s23 }
   0x9   :  { %66 = dma.hbm_to_vmem [thread:$0]  %s59_s16, 8192, %s61_s20, [#allocation9], %s1123_s17, %s1123_s17, %s1124_s18  }
   0xa   :  { %s1126_s1 = smov [#allocation11]   ;;  %s24_s3 = sshll.u32 %s1216_s0, 4  ;;  %s25_s3 = int_to_ptr.hbm [resolvable:$true] %s24_s3 }
   0xb   :  { %s84_s24 = sshll.u32 %s1126_s1, 4  ;;  %s1127_s27 = smov 512   ;;  %s85_s24 = int_to_ptr.vmem [resolvable:$true] %s84_s24 }
   0xc   :  { %s1128_s28 = smov 32   ;;  %s1129_s29 = smov [#allocation2]  }
   0xd   :  { %90 = dma.hbm_to_vmem [thread:$0]  %s83_s23, 16384, %s85_s24, [#allocation12], %s1127_s27, %s1127_s27, %s1128_s28  }
   0xe   :  { %s26_s30 = sshll.u32 %s1129_s29, 4  ;;  %s48_s5 = sshll.u32 %s1218_s2, 4  ;;  %s27_s30 = int_to_ptr.vmem [resolvable:$true] %s26_s30  ;;  %s49_s5 = int_to_ptr.hbm [resolvable:$true] %s48_s5 }
   0xf   :  { %29 = dma.hbm_to_vmem [thread:$0]  %s25_s3, 256, %s27_s30, [#allocation3]  }
  0x10   :  { %s72_s14 = sshll.u32 %s1220_s4, 4  ;;  %s1130_s15 = smov [#allocation7]   ;;  %s73_s14 = int_to_ptr.hbm [resolvable:$true] %s72_s14 }
  0x11   :  { %s50_s16 = sshll.u32 %s1130_s15, 4  ;;  %s1131_s0 = smov [#allocation10]   ;;  %s51_s16 = int_to_ptr.vmem [resolvable:$true] %s50_s16 }
  0x12   :  { %53 = dma.hbm_to_vmem [thread:$0]  %s49_s5, 32, %s51_s16, [#allocation6]  }
  0x13   :  { %s74_s17 = sshll.u32 %s1131_s0, 4  ;;  %s97_s20 = sshll.u32 %s1223_s7, 4  ;;  %s75_s17 = int_to_ptr.vmem [resolvable:$true] %s74_s17  ;;  %s98_s20 = int_to_ptr.hbm [resolvable:$true] %s97_s20 }
  0x14   :  { %77 = dma.hbm_to_vmem [thread:$0]  %s73_s14, 32, %s75_s17, [#allocation9]  }
  0x15   :  { %s1132_s2 = smov [#allocation13]   ;;  %s1133_s22 = smov 128  }
  0x16   :  { %s99_s21 = sshll.u32 %s1132_s2, 4  ;;  %s1134_s23 = smov 8   ;;  %s100_s21 = int_to_ptr.vmem [resolvable:$true] %s99_s21 }
  0x17   :  { %105 = dma.hbm_to_vmem [thread:$0]  %s98_s20, 8192, %s100_s21, [#allocation12], %s1133_s22, %s1133_s22, %s1134_s23  }
  0x18   :  { %1112 = dma.done.wait [#allocation3], 256  }
  0x19   :  { %1113 = vsyncadd [#allocation3], 4294967040 }
  0x1a   :  { %1114 = dma.done.wait [#allocation6], 8224  }
  0x1b   :  { %1115 = vsyncadd [#allocation6], 4294959072 }
  0x1c   :  { %1116 = dma.done.wait [#allocation9], 8224  }
  0x1d   :  { %1117 = vsyncadd [#allocation9], 4294959072 }
  0x1e   :  { %1118 = dma.done.wait [#allocation12], 24576  }
  0x1f   :  { %1119 = vsyncadd [#allocation12], 4294942720  ;;  %v169_v0 = vld [vmem:[#allocation5 + $0xf8] sm:$0xff]  ;;  %v167_v1 = vld [vmem:[#allocation5 + $0xe8] sm:$0xff]  ;;  %s1135_s24 = smov [#allocation14]   ;;  %s892_s27 = sshll.u32 %s1225_s9, 4  ;;  %s893_s27 = int_to_ptr.hbm [resolvable:$true] %s892_s27 }
  0x20   :  { %v201_v2 = vld [vmem:[#allocation5 + $0x1f8] sm:$0xff]  ;;  %248 = vmatpush.msra.mxu2 %v169_v0  ;;  %v168_v3 = vld [vmem:[#allocation5 + $0xf0] sm:$0xff]  ;;  %v199_v4 = vld [vmem:[#allocation5 + $0x1e8] sm:$0xff]  ;;  %s890_s25 = sshll.u32 %s1135_s24, 4  ;;  %s891_s25 = int_to_ptr.vmem [resolvable:$true] %s890_s25 }
  0x21   :  { %268 = vmatpush.msra.mxu3 %v201_v2  ;;  %208 = vmatpush.msra.mxu0 %v168_v3  ;;  %v165_v5 = vld [vmem:[#allocation5 + $0xd8] sm:$0xff]  ;;  %v166_v6 = vld [vmem:[#allocation5 + $0xe0] sm:$0xff]  ;;  %v200_v7 = vld [vmem:[#allocation5 + $0x1f0] sm:$0xff] }
  0x22   :  { %249 = vmatpush.msra.mxu2 %v167_v1  ;;  %v197_v8 = vld [vmem:[#allocation5 + $0x1d8] sm:$0xff]  ;;  %v164_v9 = vld [vmem:[#allocation5 + $0xd0] sm:$0xff]  ;;  %v198_v10 = vld [vmem:[#allocation5 + $0x1e0] sm:$0xff]  ;;  %228 = vmatpush.msra.mxu1 %v200_v7 }
  0x23   :  { %269 = vmatpush.msra.mxu3 %v199_v4  ;;  %209 = vmatpush.msra.mxu0 %v166_v6  ;;  %v163_v11 = vld [vmem:[#allocation5 + $0xc8] sm:$0xff]  ;;  %v162_v13 = vld [vmem:[#allocation5 + $0xc0] sm:$0xff]  ;;  %v196_v14 = vld [vmem:[#allocation5 + $0x1d0] sm:$0xff] }
  0x24   :  { %v195_v12 = vld [vmem:[#allocation5 + $0x1c8] sm:$0xff]  ;;  %250 = vmatpush.msra.mxu2 %v165_v5  ;;  %229 = vmatpush.msra.mxu1 %v198_v10  ;;  %v161_v15 = vld [vmem:[#allocation5 + $0xb8] sm:$0xff]  ;;  %v160_v17 = vld [vmem:[#allocation5 + $0xb0] sm:$0xff] }
  0x25   :  { %270 = vmatpush.msra.mxu3 %v197_v8  ;;  %210 = vmatpush.msra.mxu0 %v164_v9  ;;  %v193_v16 = vld [vmem:[#allocation5 + $0x1b8] sm:$0xff]  ;;  %v194_v18 = vld [vmem:[#allocation5 + $0x1c0] sm:$0xff]  ;;  %v159_v19 = vld [vmem:[#allocation5 + $0xa8] sm:$0xff] }
  0x26   :  { %251 = vmatpush.msra.mxu2 %v163_v11  ;;  %230 = vmatpush.msra.mxu1 %v196_v14  ;;  %v191_v20 = vld [vmem:[#allocation5 + $0x1a8] sm:$0xff]  ;;  %v158_v21 = vld [vmem:[#allocation5 + $0xa0] sm:$0xff]  ;;  %v192_v22 = vld [vmem:[#allocation5 + $0x1b0] sm:$0xff] }
  0x27   :  { %271 = vmatpush.msra.mxu3 %v195_v12  ;;  %211 = vmatpush.msra.mxu0 %v162_v13  ;;  %v157_v23 = vld [vmem:[#allocation5 + $0x98] sm:$0xff]  ;;  %v156_v25 = vld [vmem:[#allocation5 + $0x90] sm:$0xff]  ;;  %v190_v26 = vld [vmem:[#allocation5 + $0x1a0] sm:$0xff] }
  0x28   :  { %252 = vmatpush.msra.mxu2 %v161_v15  ;;  %231 = vmatpush.msra.mxu1 %v194_v18  ;;  %v189_v24 = vld [vmem:[#allocation5 + $0x198] sm:$0xff]  ;;  %v155_v27 = vld [vmem:[#allocation5 + $0x88] sm:$0xff]  ;;  %v154_v29 = vld [vmem:[#allocation5 + $0x80] sm:$0xff] }
  0x29   :  { %272 = vmatpush.msra.mxu3 %v193_v16  ;;  %212 = vmatpush.msra.mxu0 %v160_v17  ;;  %v187_v28 = vld [vmem:[#allocation5 + $0x188] sm:$0xff]  ;;  %v188_v30 = vld [vmem:[#allocation5 + $0x190] sm:$0xff]  ;;  %v153_v31 = vld [vmem:[#allocation5 + $0x78] sm:$0xff] }
  0x2a   :  { %253 = vmatpush.msra.mxu2 %v159_v19  ;;  %232 = vmatpush.msra.mxu1 %v192_v22  ;;  %v185_v32 = vld [vmem:[#allocation5 + $0x178] sm:$0xff]  ;;  %v152_v33 = vld [vmem:[#allocation5 + $0x70] sm:$0xff]  ;;  %v186_v34 = vld [vmem:[#allocation5 + $0x180] sm:$0xff] }
  0x2b   :  { %273 = vmatpush.msra.mxu3 %v191_v20  ;;  %213 = vmatpush.msra.mxu0 %v158_v21  ;;  %v151_v35 = vld [vmem:[#allocation5 + $0x68] sm:$0xff]  ;;  %v150_v37 = vld [vmem:[#allocation5 + $0x60] sm:$0xff]  ;;  %v184_v38 = vld [vmem:[#allocation5 + $0x170] sm:$0xff] }
  0x2c   :  { %254 = vmatpush.msra.mxu2 %v157_v23  ;;  %233 = vmatpush.msra.mxu1 %v190_v26  ;;  %v183_v36 = vld [vmem:[#allocation5 + $0x168] sm:$0xff]  ;;  %v149_v39 = vld [vmem:[#allocation5 + $0x58] sm:$0xff]  ;;  %v148_v41 = vld [vmem:[#allocation5 + $0x50] sm:$0xff] }
  0x2d   :  { %274 = vmatpush.msra.mxu3 %v189_v24  ;;  %214 = vmatpush.msra.mxu0 %v156_v25  ;;  %v181_v40 = vld [vmem:[#allocation5 + $0x158] sm:$0xff]  ;;  %v182_v42 = vld [vmem:[#allocation5 + $0x160] sm:$0xff]  ;;  %v147_v43 = vld [vmem:[#allocation5 + $0x48] sm:$0xff] }
  0x2e   :  { %255 = vmatpush.msra.mxu2 %v155_v27  ;;  %234 = vmatpush.msra.mxu1 %v188_v30  ;;  %v179_v44 = vld [vmem:[#allocation5 + $0x148] sm:$0xff]  ;;  %v146_v45 = vld [vmem:[#allocation5 + $0x40] sm:$0xff]  ;;  %v180_v46 = vld [vmem:[#allocation5 + $0x150] sm:$0xff] }
  0x2f   :  { %275 = vmatpush.msra.mxu3 %v187_v28  ;;  %215 = vmatpush.msra.mxu0 %v154_v29  ;;  %v145_v47 = vld [vmem:[#allocation5 + $0x38] sm:$0xff]  ;;  %v144_v49 = vld [vmem:[#allocation5 + $0x30] sm:$0xff]  ;;  %v178_v50 = vld [vmem:[#allocation5 + $0x140] sm:$0xff] }
  0x30   :  { %256 = vmatpush.msra.mxu2 %v153_v31  ;;  %235 = vmatpush.msra.mxu1 %v186_v34  ;;  %v177_v48 = vld [vmem:[#allocation5 + $0x138] sm:$0xff]  ;;  %v143_v51 = vld [vmem:[#allocation5 + $0x28] sm:$0xff]  ;;  %v142_v53 = vld [vmem:[#allocation5 + $0x20] sm:$0xff] }
  0x31   :  { %276 = vmatpush.msra.mxu3 %v185_v32  ;;  %216 = vmatpush.msra.mxu0 %v152_v33  ;;  %v175_v52 = vld [vmem:[#allocation5 + $0x128] sm:$0xff]  ;;  %v176_v54 = vld [vmem:[#allocation5 + $0x130] sm:$0xff]  ;;  %v141_v55 = vld [vmem:[#allocation5 + $0x18] sm:$0xff] }
  0x32   :  { %257 = vmatpush.msra.mxu2 %v151_v35  ;;  %236 = vmatpush.msra.mxu1 %v184_v38  ;;  %v173_v56 = vld [vmem:[#allocation5 + $0x118] sm:$0xff]  ;;  %v140_v57 = vld [vmem:[#allocation5 + $0x10] sm:$0xff]  ;;  %v174_v58 = vld [vmem:[#allocation5 + $0x120] sm:$0xff] }
  0x33   :  { %277 = vmatpush.msra.mxu3 %v183_v36  ;;  %217 = vmatpush.msra.mxu0 %v150_v37  ;;  %v139_v59 = vld [vmem:[#allocation5 + $0x8] sm:$0xff]  ;;  %v136_v61 = vld [vmem:[#allocation2] sm:$0xff]  ;;  %v137_v62 = vld [vmem:[#allocation2 + $0x8] sm:$0xff] }
  0x34   :  { %258 = vmatpush.msra.mxu2 %v149_v39  ;;  %237 = vmatpush.msra.mxu1 %v182_v42  ;;  %v171_v60 = vld [vmem:[#allocation5 + $0x108] sm:$0xff]  ;;  %v138_v63 = vld [vmem:[#allocation5] sm:$0xff]  ;;  %v172_v0 = vld [vmem:[#allocation5 + $0x110] sm:$0xff] }
  0x35   :  { %278 = vmatpush.msra.mxu3 %v181_v40  ;;  %218 = vmatpush.msra.mxu0 %v148_v41  ;;  %v319_v1 = vld [vmem:[#allocation8 + $0xf8] sm:$0xff]  ;;  %v318_v3 = vld [vmem:[#allocation8 + $0xf0] sm:$0xff]  ;;  %v317_v4 = vld [vmem:[#allocation8 + $0xe8] sm:$0xff] }
  0x36   :  { %259 = vmatpush.msra.mxu2 %v147_v43  ;;  %238 = vmatpush.msra.mxu1 %v180_v46  ;;  %v170_v2 = vld [vmem:[#allocation5 + $0x100] sm:$0xff]  ;;  %v350_v6 = vld [vmem:[#allocation8 + $0x1f0] sm:$0xff]  ;;  %v349_v11 = vld [vmem:[#allocation8 + $0x1e8] sm:$0xff] }
  0x37   :  { %279 = vmatpush.msra.mxu3 %v179_v44  ;;  %219 = vmatpush.msra.mxu0 %v146_v45  ;;  %v316_v5 = vld [vmem:[#allocation8 + $0xe0] sm:$0xff]  ;;  %v351_v7 = vld [vmem:[#allocation8 + $0x1f8] sm:$0xff]  ;;  %v314_v9 = vld [vmem:[#allocation8 + $0xd0] sm:$0xff] }
  0x38   :  { %260 = vmatpush.msra.mxu2 %v145_v47  ;;  %239 = vmatpush.msra.mxu1 %v178_v50  ;;  %v315_v8 = vld [vmem:[#allocation8 + $0xd8] sm:$0xff]  ;;  %v348_v10 = vld [vmem:[#allocation8 + $0x1e0] sm:$0xff]  ;;  %v313_v12 = vld [vmem:[#allocation8 + $0xc8] sm:$0xff] }
  0x39   :  { %280 = vmatpush.msra.mxu3 %v177_v48  ;;  %220 = vmatpush.msra.mxu0 %v144_v49  ;;  %v312_v13 = vld [vmem:[#allocation8 + $0xc0] sm:$0xff]  ;;  %v346_v14 = vld [vmem:[#allocation8 + $0x1d0] sm:$0xff]  ;;  %v347_v15 = vld [vmem:[#allocation8 + $0x1d8] sm:$0xff] }
  0x3a   :  { %261 = vmatpush.msra.mxu2 %v143_v51  ;;  %240 = vmatpush.msra.mxu1 %v176_v54  ;;  %v311_v16 = vld [vmem:[#allocation8 + $0xb8] sm:$0xff]  ;;  %v310_v17 = vld [vmem:[#allocation8 + $0xb0] sm:$0xff]  ;;  %v344_v18 = vld [vmem:[#allocation8 + $0x1c0] sm:$0xff] }
  0x3b   :  { %281 = vmatpush.msra.mxu3 %v175_v52  ;;  %221 = vmatpush.msra.mxu0 %v142_v53  ;;  %v345_v19 = vld [vmem:[#allocation8 + $0x1c8] sm:$0xff]  ;;  %v308_v21 = vld [vmem:[#allocation8 + $0xa0] sm:$0xff]  ;;  %v342_v22 = vld [vmem:[#allocation8 + $0x1b0] sm:$0xff] }
  0x3c   :  { %262 = vmatpush.msra.mxu2 %v141_v55  ;;  %241 = vmatpush.msra.mxu1 %v174_v58  ;;  %v309_v20 = vld [vmem:[#allocation8 + $0xa8] sm:$0xff]  ;;  %v343_v23 = vld [vmem:[#allocation8 + $0x1b8] sm:$0xff]  ;;  %v306_v25 = vld [vmem:[#allocation8 + $0x90] sm:$0xff] }
  0x3d   :  { %282 = vmatpush.msra.mxu3 %v173_v56  ;;  %222 = vmatpush.msra.mxu0 %v140_v57  ;;  %v307_v24 = vld [vmem:[#allocation8 + $0x98] sm:$0xff]  ;;  %v340_v26 = vld [vmem:[#allocation8 + $0x1a0] sm:$0xff]  ;;  %v341_v27 = vld [vmem:[#allocation8 + $0x1a8] sm:$0xff] }
  0x3e   :  { %263 = vmatpush.msra.mxu2 %v139_v59  ;;  %242 = vmatpush.msra.mxu1 %v172_v0  ;;  %v305_v28 = vld [vmem:[#allocation8 + $0x88] sm:$0xff]  ;;  %v304_v29 = vld [vmem:[#allocation8 + $0x80] sm:$0xff]  ;;  %v338_v30 = vld [vmem:[#allocation8 + $0x190] sm:$0xff] }
  0x3f   :  { %283 = vmatpush.msra.mxu3 %v171_v60  ;;  %264 = vmatmul.f32.vlgmr.msra.gmra.mxu2 %v136_v61  ;;  %v339_v31 = vld [vmem:[#allocation8 + $0x198] sm:$0xff]  ;;  %v302_v33 = vld [vmem:[#allocation8 + $0x70] sm:$0xff]  ;;  %v336_v34 = vld [vmem:[#allocation8 + $0x180] sm:$0xff] }
  0x40   :  { %284 = vmatmul.f32.vlgmr.msra.gmra.mxu3 %v137_v62  ;;  %223 = vmatpush.msra.mxu0 %v138_v63  ;;  %v303_v32 = vld [vmem:[#allocation8 + $0x78] sm:$0xff]  ;;  %v337_v35 = vld [vmem:[#allocation8 + $0x188] sm:$0xff]  ;;  %v300_v37 = vld [vmem:[#allocation8 + $0x60] sm:$0xff] }
  0x41   :  { %224 = vmatmul.f32.vlgmr.msra.gmra.mxu0 %v136_v61  ;;  %398 = vmatpush.msrb.mxu2 %v319_v1  ;;  %v301_v36 = vld [vmem:[#allocation8 + $0x68] sm:$0xff]  ;;  %v334_v38 = vld [vmem:[#allocation8 + $0x170] sm:$0xff]  ;;  %v335_v39 = vld [vmem:[#allocation8 + $0x178] sm:$0xff] }
  0x42   :  { %243 = vmatpush.msra.mxu1 %v170_v2  ;;  %358 = vmatpush.msrb.mxu0 %v318_v3  ;;  %v299_v40 = vld [vmem:[#allocation8 + $0x58] sm:$0xff]  ;;  %v298_v41 = vld [vmem:[#allocation8 + $0x50] sm:$0xff]  ;;  %v332_v42 = vld [vmem:[#allocation8 + $0x160] sm:$0xff] }
  0x43   :  { %244 = vmatmul.f32.vlgmr.msra.gmra.mxu1 %v137_v62  ;;  %399 = vmatpush.msrb.mxu2 %v317_v4  ;;  %v333_v43 = vld [vmem:[#allocation8 + $0x168] sm:$0xff]  ;;  %v296_v45 = vld [vmem:[#allocation8 + $0x40] sm:$0xff]  ;;  %v330_v46 = vld [vmem:[#allocation8 + $0x150] sm:$0xff] }
  0x44   :  { %359 = vmatpush.msrb.mxu0 %v316_v5  ;;  %378 = vmatpush.msrb.mxu1 %v350_v6  ;;  %v297_v44 = vld [vmem:[#allocation8 + $0x48] sm:$0xff]  ;;  %v331_v47 = vld [vmem:[#allocation8 + $0x158] sm:$0xff]  ;;  %v294_v49 = vld [vmem:[#allocation8 + $0x30] sm:$0xff] }
  0x45   :  { %418 = vmatpush.msrb.mxu3 %v351_v7  ;;  %400 = vmatpush.msrb.mxu2 %v315_v8  ;;  %v295_v48 = vld [vmem:[#allocation8 + $0x38] sm:$0xff]  ;;  %v328_v50 = vld [vmem:[#allocation8 + $0x140] sm:$0xff]  ;;  %v329_v51 = vld [vmem:[#allocation8 + $0x148] sm:$0xff] }
  0x46   :  { %360 = vmatpush.msrb.mxu0 %v314_v9  ;;  %379 = vmatpush.msrb.mxu1 %v348_v10  ;;  %v292_v52 = vld [vmem:[#allocation8 + $0x20] sm:$0xff]  ;;  %v326_v53 = vld [vmem:[#allocation8 + $0x130] sm:$0xff]  ;;  %v293_v54 = vld [vmem:[#allocation8 + $0x28] sm:$0xff] }
  0x47   :  { %419 = vmatpush.msrb.mxu3 %v349_v11  ;;  %401 = vmatpush.msrb.mxu2 %v313_v12  ;;  %v327_v55 = vld [vmem:[#allocation8 + $0x138] sm:$0xff]  ;;  %v290_v56 = vld [vmem:[#allocation8 + $0x10] sm:$0xff]  ;;  %v324_v57 = vld [vmem:[#allocation8 + $0x120] sm:$0xff] }
  0x48   :  { %361 = vmatpush.msrb.mxu0 %v312_v13  ;;  %380 = vmatpush.msrb.mxu1 %v346_v14  ;;  %v291_v58 = vld [vmem:[#allocation8 + $0x18] sm:$0xff]  ;;  %v325_v59 = vld [vmem:[#allocation8 + $0x128] sm:$0xff]  ;;  %v288_v60 = vld [vmem:[#allocation8] sm:$0xff] }
  0x49   :  { %420 = vmatpush.msrb.mxu3 %v347_v15  ;;  %402 = vmatpush.msrb.mxu2 %v311_v16  ;;  %v322_v61 = vld [vmem:[#allocation8 + $0x110] sm:$0xff]  ;;  %v289_v62 = vld [vmem:[#allocation8 + $0x8] sm:$0xff]  ;;  %v323_v63 = vld [vmem:[#allocation8 + $0x118] sm:$0xff] }
  0x4a   :  { %362 = vmatpush.msrb.mxu0 %v310_v17  ;;  %381 = vmatpush.msrb.mxu1 %v344_v18  ;;  %v320_v0 = vld [vmem:[#allocation8 + $0x100] sm:$0xff]  ;;  %v321_v1 = vld [vmem:[#allocation8 + $0x108] sm:$0xff] }
  0x4b   :  { %421 = vmatpush.msrb.mxu3 %v345_v19  ;;  %403 = vmatpush.msrb.mxu2 %v309_v20  ;;  %v498_v2 = vld [vmem:[#allocation11 + $0x1e0] sm:$0xff]  ;;  %v499_v3 = vld [vmem:[#allocation11 + $0x1e8] sm:$0xff] }
  0x4c   :  { %363 = vmatpush.msrb.mxu0 %v308_v21  ;;  %382 = vmatpush.msrb.mxu1 %v342_v22  ;;  %v494_v4 = vld [vmem:[#allocation11 + $0x1c0] sm:$0xff]  ;;  %v495_v5 = vld [vmem:[#allocation11 + $0x1c8] sm:$0xff] }
  0x4d   :  { %422 = vmatpush.msrb.mxu3 %v343_v23  ;;  %404 = vmatpush.msrb.mxu2 %v307_v24  ;;  %v490_v6 = vld [vmem:[#allocation11 + $0x1a0] sm:$0xff]  ;;  %v491_v7 = vld [vmem:[#allocation11 + $0x1a8] sm:$0xff] }
  0x4e   :  { %364 = vmatpush.msrb.mxu0 %v306_v25  ;;  %383 = vmatpush.msrb.mxu1 %v340_v26  ;;  %v562_v8 = vld [vmem:[#allocation11 + $0x3e0] sm:$0xff]  ;;  %v563_v9 = vld [vmem:[#allocation11 + $0x3e8] sm:$0xff] }
  0x4f   :  { %423 = vmatpush.msrb.mxu3 %v341_v27  ;;  %405 = vmatpush.msrb.mxu2 %v305_v28  ;;  %v558_v10 = vld [vmem:[#allocation11 + $0x3c0] sm:$0xff]  ;;  %v487_v12 = vld [vmem:[#allocation11 + $0x188] sm:$0xff] }
  0x50   :  { %365 = vmatpush.msrb.mxu0 %v304_v29  ;;  %384 = vmatpush.msrb.mxu1 %v338_v30  ;;  %v486_v11 = vld [vmem:[#allocation11 + $0x180] sm:$0xff]  ;;  %v559_v13 = vld [vmem:[#allocation11 + $0x3c8] sm:$0xff] }
  0x51   :  { %424 = vmatpush.msrb.mxu3 %v339_v31  ;;  %406 = vmatpush.msrb.mxu2 %v303_v32  ;;  %v554_v14 = vld [vmem:[#allocation11 + $0x3a0] sm:$0xff]  ;;  %v555_v15 = vld [vmem:[#allocation11 + $0x3a8] sm:$0xff] }
  0x52   :  { %366 = vmatpush.msrb.mxu0 %v302_v33  ;;  %385 = vmatpush.msrb.mxu1 %v336_v34  ;;  %v482_v16 = vld [vmem:[#allocation11 + $0x160] sm:$0xff]  ;;  %v483_v17 = vld [vmem:[#allocation11 + $0x168] sm:$0xff] }
  0x53   :  { %425 = vmatpush.msrb.mxu3 %v337_v35  ;;  %407 = vmatpush.msrb.mxu2 %v301_v36  ;;  %v550_v18 = vld [vmem:[#allocation11 + $0x380] sm:$0xff]  ;;  %v551_v19 = vld [vmem:[#allocation11 + $0x388] sm:$0xff] }
  0x54   :  { %367 = vmatpush.msrb.mxu0 %v300_v37  ;;  %386 = vmatpush.msrb.mxu1 %v334_v38  ;;  %v478_v20 = vld [vmem:[#allocation11 + $0x140] sm:$0xff]  ;;  %v479_v21 = vld [vmem:[#allocation11 + $0x148] sm:$0xff]  ;;  %v202_v38 = vld [vmem:[#allocation7] sm:$0x3] }
  0x55   :  { %426 = vmatpush.msrb.mxu3 %v335_v39  ;;  %408 = vmatpush.msrb.mxu2 %v299_v40  ;;  %v546_v22 = vld [vmem:[#allocation11 + $0x360] sm:$0xff]  ;;  %v547_v23 = vld [vmem:[#allocation11 + $0x368] sm:$0xff] }
  0x56   :  { %368 = vmatpush.msrb.mxu0 %v298_v41  ;;  %387 = vmatpush.msrb.mxu1 %v332_v42  ;;  %v474_v24 = vld [vmem:[#allocation11 + $0x120] sm:$0xff]  ;;  %v475_v25 = vld [vmem:[#allocation11 + $0x128] sm:$0xff] }
  0x57   :  { %427 = vmatpush.msrb.mxu3 %v333_v43  ;;  %409 = vmatpush.msrb.mxu2 %v297_v44  ;;  %v542_v26 = vld [vmem:[#allocation11 + $0x340] sm:$0xff]  ;;  %v543_v27 = vld [vmem:[#allocation11 + $0x348] sm:$0xff] }
  0x58   :  { %369 = vmatpush.msrb.mxu0 %v296_v45  ;;  %388 = vmatpush.msrb.mxu1 %v330_v46  ;;  %v470_v28 = vld [vmem:[#allocation11 + $0x100] sm:$0xff]  ;;  %v471_v29 = vld [vmem:[#allocation11 + $0x108] sm:$0xff]  ;;  %v204_v45 = vperm.slane %v202_v38, 0 }
  0x59   :  { %428 = vmatpush.msrb.mxu3 %v331_v47  ;;  %410 = vmatpush.msrb.mxu2 %v295_v48  ;;  %v538_v30 = vld [vmem:[#allocation11 + $0x320] sm:$0xff]  ;;  %v539_v31 = vld [vmem:[#allocation11 + $0x328] sm:$0xff] }
  0x5a   :  { %370 = vmatpush.msrb.mxu0 %v294_v49  ;;  %389 = vmatpush.msrb.mxu1 %v328_v50  ;;  %v466_v32 = vld [vmem:[#allocation11 + $0xe0] sm:$0xff]  ;;  %v467_v33 = vld [vmem:[#allocation11 + $0xe8] sm:$0xff] }
  0x5b   :  { %429 = vmatpush.msrb.mxu3 %v329_v51  ;;  %411 = vmatpush.msrb.mxu2 %v293_v54  ;;  %v534_v34 = vld [vmem:[#allocation11 + $0x300] sm:$0xff]  ;;  %v535_v35 = vld [vmem:[#allocation11 + $0x308] sm:$0xff] }
  0x5c   :  { %371 = vmatpush.msrb.mxu0 %v292_v52  ;;  %390 = vmatpush.msrb.mxu1 %v326_v53  ;;  %v462_v36 = vld [vmem:[#allocation11 + $0xc0] sm:$0xff]  ;;  %v463_v37 = vld [vmem:[#allocation11 + $0xc8] sm:$0xff] }
  0x5d   :  { %430 = vmatpush.msrb.mxu3 %v327_v55  ;;  %412 = vmatpush.msrb.mxu2 %v291_v58  ;;  %v530_v39 = vld [vmem:[#allocation11 + $0x2e0] sm:$0xff]  ;;  %v531_v40 = vld [vmem:[#allocation11 + $0x2e8] sm:$0xff] }
  0x5e   :  { %372 = vmatpush.msrb.mxu0 %v290_v56  ;;  %391 = vmatpush.msrb.mxu1 %v324_v57  ;;  %v458_v41 = vld [vmem:[#allocation11 + $0xa0] sm:$0xff]  ;;  %v459_v42 = vld [vmem:[#allocation11 + $0xa8] sm:$0xff]  ;;  %v205_v56 = vperm.slane %v202_v38, 1  ;;  %v549_v38 = vld [vmem:[#allocation11 + $0x378] sm:$0xff] }
  0x5f   :  { %431 = vmatpush.msrb.mxu3 %v325_v59  ;;  %413 = vmatpush.msrb.mxu2 %v289_v62  ;;  %v526_v43 = vld [vmem:[#allocation11 + $0x2c0] sm:$0xff]  ;;  %v527_v44 = vld [vmem:[#allocation11 + $0x2c8] sm:$0xff] }
  0x60   :  { %373 = vmatpush.msrb.mxu0 %v288_v60  ;;  %392 = vmatpush.msrb.mxu1 %v322_v61  ;;  %v454_v46 = vld [vmem:[#allocation11 + $0x80] sm:$0xff]  ;;  %v455_v47 = vld [vmem:[#allocation11 + $0x88] sm:$0xff] }
  0x61   :  { %432 = vmatpush.msrb.mxu3 %v323_v63  ;;  %616 = vmatpush.msra.mxu2 %v499_v3  ;;  %v522_v48 = vld [vmem:[#allocation11 + $0x2a0] sm:$0xff]  ;;  %v523_v49 = vld [vmem:[#allocation11 + $0x2a8] sm:$0xff] }
  0x62   :  { %393 = vmatpush.msrb.mxu1 %v320_v0  ;;  %576 = vmatpush.msra.mxu0 %v498_v2  ;;  %v450_v50 = vld [vmem:[#allocation11 + $0x60] sm:$0xff]  ;;  %v451_v51 = vld [vmem:[#allocation11 + $0x68] sm:$0xff] }
  0x63   :  { %433 = vmatpush.msrb.mxu3 %v321_v1  ;;  %617 = vmatpush.msra.mxu2 %v495_v5  ;;  %v518_v53 = vld [vmem:[#allocation11 + $0x280] sm:$0xff]  ;;  %v519_v54 = vld [vmem:[#allocation11 + $0x288] sm:$0xff] }
  0x64   :  { %577 = vmatpush.msra.mxu0 %v494_v4  ;;  %596 = vmatpush.msra.mxu1 %v562_v8  ;;  %v446_v57 = vld [vmem:[#allocation11 + $0x40] sm:$0xff]  ;;  %v447_v58 = vld [vmem:[#allocation11 + $0x48] sm:$0xff]  ;;  %v501_v8 = vld [vmem:[#allocation11 + $0x1f8] sm:$0xff] }
  0x65   :  { %636 = vmatpush.msra.mxu3 %v563_v9  ;;  %618 = vmatpush.msra.mxu2 %v491_v7  ;;  %v442_v61 = vld [vmem:[#allocation11 + $0x20] sm:$0xff]  ;;  %v443_v62 = vld [vmem:[#allocation11 + $0x28] sm:$0xff]  ;;  %v500_v7 = vld [vmem:[#allocation11 + $0x1f0] sm:$0xff] }
  0x66   :  { %578 = vmatpush.msra.mxu0 %v490_v6  ;;  %597 = vmatpush.msra.mxu1 %v558_v10  ;;  %v514_v1 = vld [vmem:[#allocation11 + $0x260] sm:$0xff]  ;;  %v515_v2 = vld [vmem:[#allocation11 + $0x268] sm:$0xff] }
  0x67   :  { %637 = vmatpush.msra.mxu3 %v559_v13  ;;  %619 = vmatpush.msra.mxu2 %v487_v12  ;;  %v438_v4 = vld [vmem:[#allocation11] sm:$0xff]  ;;  %v439_v5 = vld [vmem:[#allocation11 + $0x8] sm:$0xff]  ;;  %v497_v12 = vld [vmem:[#allocation11 + $0x1d8] sm:$0xff] }
  0x68   :  { %579 = vmatpush.msra.mxu0 %v486_v11  ;;  %598 = vmatpush.msra.mxu1 %v554_v14  ;;  %v510_v9 = vld [vmem:[#allocation11 + $0x240] sm:$0xff]  ;;  %v511_v10 = vld [vmem:[#allocation11 + $0x248] sm:$0xff]  ;;  %v496_v11 = vld [vmem:[#allocation11 + $0x1d0] sm:$0xff] }
  0x69   :  { %638 = vmatpush.msra.mxu3 %v555_v15  ;;  %620 = vmatpush.msra.mxu2 %v483_v17  ;;  %v506_v13 = vld [vmem:[#allocation11 + $0x220] sm:$0xff]  ;;  %v507_v14 = vld [vmem:[#allocation11 + $0x228] sm:$0xff]  ;;  %v492_v15 = vld [vmem:[#allocation11 + $0x1b0] sm:$0xff] }
  0x6a   :  { %580 = vmatpush.msra.mxu0 %v482_v16  ;;  %599 = vmatpush.msra.mxu1 %v550_v18  ;;  %v493_v16 = vld [vmem:[#allocation11 + $0x1b8] sm:$0xff]  ;;  %v502_v17 = vld [vmem:[#allocation11 + $0x200] sm:$0xff]  ;;  %v503_v18 = vld [vmem:[#allocation11 + $0x208] sm:$0xff] }
  0x6b   :  { %639 = vmatpush.msra.mxu3 %v551_v19  ;;  %621 = vmatpush.msra.mxu2 %v479_v21  ;;  %v488_v19 = vld [vmem:[#allocation11 + $0x190] sm:$0xff]  ;;  %v489_v21 = vld [vmem:[#allocation11 + $0x198] sm:$0xff] }
  0x6c   :  { %581 = vmatpush.msra.mxu0 %v478_v20  ;;  %600 = vmatpush.msra.mxu1 %v546_v22  ;;  %v564_v20 = vld [vmem:[#allocation11 + $0x3f0] sm:$0xff]  ;;  %v565_v22 = vld [vmem:[#allocation11 + $0x3f8] sm:$0xff] }
  0x6d   :  { %640 = vmatpush.msra.mxu3 %v547_v23  ;;  %622 = vmatpush.msra.mxu2 %v475_v25  ;;  %v484_v23 = vld [vmem:[#allocation11 + $0x170] sm:$0xff]  ;;  %v485_v25 = vld [vmem:[#allocation11 + $0x178] sm:$0xff] }
  0x6e   :  { %582 = vmatpush.msra.mxu0 %v474_v24  ;;  %601 = vmatpush.msra.mxu1 %v542_v26  ;;  %v560_v24 = vld [vmem:[#allocation11 + $0x3d0] sm:$0xff]  ;;  %v561_v26 = vld [vmem:[#allocation11 + $0x3d8] sm:$0xff] }
  0x6f   :  { %641 = vmatpush.msra.mxu3 %v543_v27  ;;  %623 = vmatpush.msra.mxu2 %v471_v29  ;;  %v480_v27 = vld [vmem:[#allocation11 + $0x150] sm:$0xff]  ;;  %v481_v29 = vld [vmem:[#allocation11 + $0x158] sm:$0xff] }
  0x70   :  { %583 = vmatpush.msra.mxu0 %v470_v28  ;;  %602 = vmatpush.msra.mxu1 %v538_v30  ;;  %v556_v28 = vld [vmem:[#allocation11 + $0x3b0] sm:$0xff]  ;;  %v557_v30 = vld [vmem:[#allocation11 + $0x3b8] sm:$0xff] }
  0x71   :  { %642 = vmatpush.msra.mxu3 %v539_v31  ;;  %624 = vmatpush.msra.mxu2 %v467_v33  ;;  %v476_v31 = vld [vmem:[#allocation11 + $0x130] sm:$0xff]  ;;  %v477_v33 = vld [vmem:[#allocation11 + $0x138] sm:$0xff] }
  0x72   :  { %584 = vmatpush.msra.mxu0 %v466_v32  ;;  %603 = vmatpush.msra.mxu1 %v534_v34  ;;  %v552_v32 = vld [vmem:[#allocation11 + $0x390] sm:$0xff]  ;;  %v553_v34 = vld [vmem:[#allocation11 + $0x398] sm:$0xff] }
  0x73   :  { %643 = vmatpush.msra.mxu3 %v535_v35  ;;  %625 = vmatpush.msra.mxu2 %v463_v37  ;;  %v472_v35 = vld [vmem:[#allocation11 + $0x110] sm:$0xff]  ;;  %v473_v37 = vld [vmem:[#allocation11 + $0x118] sm:$0xff] }
  0x74   :  { %585 = vmatpush.msra.mxu0 %v462_v36  ;;  %604 = vmatpush.msra.mxu1 %v530_v39  ;;  %v548_v36 = vld [vmem:[#allocation11 + $0x370] sm:$0xff] }
  0x75   :  { %644 = vmatpush.msra.mxu3 %v531_v40  ;;  %626 = vmatpush.msra.mxu2 %v459_v42  ;;  %v468_v39 = vld [vmem:[#allocation11 + $0xf0] sm:$0xff]  ;;  %v545_v42 = vld [vmem:[#allocation11 + $0x358] sm:$0xff] }
  0x76   :  { %586 = vmatpush.msra.mxu0 %v458_v41  ;;  %605 = vmatpush.msra.mxu1 %v526_v43  ;;  %v544_v40 = vld [vmem:[#allocation11 + $0x350] sm:$0xff]  ;;  %v469_v41 = vld [vmem:[#allocation11 + $0xf8] sm:$0xff] }
  0x77   :  { %645 = vmatpush.msra.mxu3 %v527_v44  ;;  %627 = vmatpush.msra.mxu2 %v455_v47  ;;  %v464_v43 = vld [vmem:[#allocation11 + $0xd0] sm:$0xff] }
  0x78   :  { %587 = vmatpush.msra.mxu0 %v454_v46  ;;  %606 = vmatpush.msra.mxu1 %v522_v48  ;;  %v540_v44 = vld [vmem:[#allocation11 + $0x330] sm:$0xff]  ;;  %v541_v46 = vld [vmem:[#allocation11 + $0x338] sm:$0xff] }
  0x79   :  { %646 = vmatpush.msra.mxu3 %v523_v49  ;;  %628 = vmatpush.msra.mxu2 %v451_v51  ;;  %v460_v47 = vld [vmem:[#allocation11 + $0xb0] sm:$0xff]  ;;  %v461_v49 = vld [vmem:[#allocation11 + $0xb8] sm:$0xff] }
  0x7a   :  { %588 = vmatpush.msra.mxu0 %v450_v50  ;;  %607 = vmatpush.msra.mxu1 %v518_v53  ;;  %v536_v48 = vld [vmem:[#allocation11 + $0x310] sm:$0xff]  ;;  %v537_v50 = vld [vmem:[#allocation11 + $0x318] sm:$0xff] }
  0x7b   :  { %647 = vmatpush.msra.mxu3 %v519_v54  ;;  %629 = vmatpush.msra.mxu2 %v447_v58  ;;  %v456_v51 = vld [vmem:[#allocation11 + $0x90] sm:$0xff]  ;;  %v457_v53 = vld [vmem:[#allocation11 + $0x98] sm:$0xff] }
  0x7c   :  { %589 = vmatpush.msra.mxu0 %v446_v57  ;;  %608 = vmatpush.msra.mxu1 %v514_v1  ;;  %v533_v54 = vld [vmem:[#allocation11 + $0x2f8] sm:$0xff] }
  0x7d   :  { %630 = vmatpush.msra.mxu2 %v443_v62  ;;  %648 = vmatpush.msra.mxu3 %v515_v2  ;;  %v453_v57 = vld [vmem:[#allocation11 + $0x78] sm:$0xff] }
  0x7e   :  { %590 = vmatpush.msra.mxu0 %v442_v61  ;;  %609 = vmatpush.msra.mxu1 %v510_v9  ;;  %v529_v58 = vld [vmem:[#allocation11 + $0x2d8] sm:$0xff]  ;;  %v508_v9 = vld [vmem:[#allocation11 + $0x230] sm:$0xff] }
  0x7f   :  { %631 = vmatpush.msra.mxu2 %v439_v5  ;;  %649 = vmatpush.msra.mxu3 %v511_v10  ;;  %v449_v61 = vld [vmem:[#allocation11 + $0x58] sm:$0xff] }
  0x80   :  { %591 = vmatpush.msra.mxu0 %v438_v4  ;;  %610 = vmatpush.msra.mxu1 %v506_v13  ;;  %v525_v62 = vld [vmem:[#allocation11 + $0x2b8] sm:$0xff]  ;;  %v516_v4 = vld [vmem:[#allocation11 + $0x270] sm:$0xff] }
  0x81   :  { %650 = vmatpush.msra.mxu3 %v507_v14  ;;  %v445_v1 = vld [vmem:[#allocation11 + $0x38] sm:$0xff] }
  0x82   :  { %611 = vmatpush.msra.mxu1 %v502_v17  ;;  %v521_v2 = vld [vmem:[#allocation11 + $0x298] sm:$0xff] }
  0x83   :  { %651 = vmatpush.msra.mxu3 %v503_v18  ;;  %v441_v5 = vld [vmem:[#allocation11 + $0x18] sm:$0xff] }
  0x84   :  { %v509_v10 = vld [vmem:[#allocation11 + $0x238] sm:$0xff] }
  0x85   :  { %v352_v13 = vld [vmem:[#allocation10] sm:$0x3] }
  0x86   :  { %v354_v14 = vperm.slane %v352_v13, 0  ;;  %v355_v17 = vperm.slane %v352_v13, 1  ;;  %v753_v13 = vld [vmem:[#allocation13 + $0x88] sm:$0xff] }
  0xbe   :  { %v225_v52 = vpop.f32.mrf.mxu0 }
  0xbf   :  { %v226_v55 = vadd.f32 %v225_v52, %v204_v45  ;;  %v465_v45 = vld [vmem:[#allocation11 + $0xd8] sm:$0xff]  ;;  %v532_v52 = vld [vmem:[#allocation11 + $0x2f0] sm:$0xff] }
  0xc0   :  { %v245_v59 = vpop.f32.mrf.mxu1 }
  0xc1   :  { %v246_v60 = vadd.f32 %v245_v59, %v226_v55  ;;  %v452_v55 = vld [vmem:[#allocation11 + $0x70] sm:$0xff] }
  0xc2   :  { %v265_v63 = vpop.f32.mrf.mxu2  ;;  %v448_v59 = vld [vmem:[#allocation11 + $0x50] sm:$0xff] }
  0xc3   :  { %v285_v0 = vpop.f32.mrf.mxu3  ;;  %v266_v3 = vadd.f32 %v265_v63, %v205_v56  ;;  %374 = vmatmul.f32.vlgmr.msrb.gmra.mxu0 %v246_v60  ;;  %414 = vmatmul.f32.vlgmr.msrb.gmra.mxu2 %v246_v60  ;;  %v528_v56 = vld [vmem:[#allocation11 + $0x2d0] sm:$0xff] }
  0xc4   :  { %656 = vmatpush.msrb.mxu0 %v500_v7  ;;  %696 = vmatpush.msrb.mxu2 %v501_v8  ;;  %v524_v60 = vld [vmem:[#allocation11 + $0x2b0] sm:$0xff]  ;;  %v513_v8 = vld [vmem:[#allocation11 + $0x258] sm:$0xff] }
  0xc5   :  { %v286_v6 = vadd.f32 %v285_v0, %v266_v3  ;;  %v444_v63 = vld [vmem:[#allocation11 + $0x30] sm:$0xff] }
  0xc6   :  { %657 = vmatpush.msrb.mxu0 %v496_v11  ;;  %697 = vmatpush.msrb.mxu2 %v497_v12  ;;  %v520_v0 = vld [vmem:[#allocation11 + $0x290] sm:$0xff]  ;;  %v505_v12 = vld [vmem:[#allocation11 + $0x218] sm:$0xff] }
  0xc7   :  { %394 = vmatmul.f32.vlgmr.msrb.gmra.mxu1 %v286_v6  ;;  %434 = vmatmul.f32.vlgmr.msrb.gmra.mxu3 %v286_v6  ;;  %v440_v3 = vld [vmem:[#allocation11 + $0x10] sm:$0xff]  ;;  %v517_v6 = vld [vmem:[#allocation11 + $0x278] sm:$0xff] }
  0xc8   :  { %658 = vmatpush.msrb.mxu0 %v492_v15  ;;  %698 = vmatpush.msrb.mxu2 %v493_v16  ;;  %v512_v7 = vld [vmem:[#allocation11 + $0x250] sm:$0xff] }
  0xc9   :  { %676 = vmatpush.msrb.mxu1 %v564_v20  ;;  %716 = vmatpush.msrb.mxu3 %v565_v22  ;;  %v504_v11 = vld [vmem:[#allocation11 + $0x210] sm:$0xff]  ;;  %v751_v20 = vld [vmem:[#allocation13 + $0x78] sm:$0xff] }
  0xca   :  { %659 = vmatpush.msrb.mxu0 %v488_v19  ;;  %699 = vmatpush.msrb.mxu2 %v489_v21  ;;  %v783_v21 = vld [vmem:[#allocation13 + $0x178] sm:$0xff] }
  0xcb   :  { %677 = vmatpush.msrb.mxu1 %v560_v24  ;;  %717 = vmatpush.msrb.mxu3 %v561_v26  ;;  %v750_v24 = vld [vmem:[#allocation13 + $0x70] sm:$0xff]  ;;  %v749_v26 = vld [vmem:[#allocation13 + $0x68] sm:$0xff] }
  0xcc   :  { %660 = vmatpush.msrb.mxu0 %v484_v23  ;;  %700 = vmatpush.msrb.mxu2 %v485_v25  ;;  %v782_v25 = vld [vmem:[#allocation13 + $0x170] sm:$0xff] }
  0xcd   :  { %678 = vmatpush.msrb.mxu1 %v556_v28  ;;  %718 = vmatpush.msrb.mxu3 %v557_v30  ;;  %v748_v30 = vld [vmem:[#allocation13 + $0x60] sm:$0xff] }
  0xce   :  { %661 = vmatpush.msrb.mxu0 %v480_v27  ;;  %701 = vmatpush.msrb.mxu2 %v481_v29  ;;  %v781_v27 = vld [vmem:[#allocation13 + $0x168] sm:$0xff] }
  0xcf   :  { %679 = vmatpush.msrb.mxu1 %v552_v32  ;;  %719 = vmatpush.msrb.mxu3 %v553_v34  ;;  %v747_v32 = vld [vmem:[#allocation13 + $0x58] sm:$0xff]  ;;  %v780_v34 = vld [vmem:[#allocation13 + $0x160] sm:$0xff] }
  0xd0   :  { %662 = vmatpush.msrb.mxu0 %v476_v31  ;;  %702 = vmatpush.msrb.mxu2 %v477_v33  ;;  %v767_v31 = vld [vmem:[#allocation13 + $0xf8] sm:$0xff]  ;;  %v766_v33 = vld [vmem:[#allocation13 + $0xf0] sm:$0xff] }
  0xd1   :  { %680 = vmatpush.msrb.mxu1 %v548_v36  ;;  %720 = vmatpush.msrb.mxu3 %v549_v38  ;;  %v746_v36 = vld [vmem:[#allocation13 + $0x50] sm:$0xff]  ;;  %v779_v38 = vld [vmem:[#allocation13 + $0x158] sm:$0xff] }
  0xd2   :  { %663 = vmatpush.msrb.mxu0 %v472_v35  ;;  %703 = vmatpush.msrb.mxu2 %v473_v37  ;;  %v799_v35 = vld [vmem:[#allocation13 + $0x1f8] sm:$0xff]  ;;  %v765_v37 = vld [vmem:[#allocation13 + $0xe8] sm:$0xff] }
  0xd3   :  { %681 = vmatpush.msrb.mxu1 %v544_v40  ;;  %721 = vmatpush.msrb.mxu3 %v545_v42  ;;  %v745_v40 = vld [vmem:[#allocation13 + $0x48] sm:$0xff]  ;;  %v744_v42 = vld [vmem:[#allocation13 + $0x40] sm:$0xff] }
  0xd4   :  { %664 = vmatpush.msrb.mxu0 %v468_v39  ;;  %704 = vmatpush.msrb.mxu2 %v469_v41  ;;  %v798_v39 = vld [vmem:[#allocation13 + $0x1f0] sm:$0xff]  ;;  %v764_v41 = vld [vmem:[#allocation13 + $0xe0] sm:$0xff] }
  0xd5   :  { %682 = vmatpush.msrb.mxu1 %v540_v44  ;;  %722 = vmatpush.msrb.mxu3 %v541_v46  ;;  %v778_v44 = vld [vmem:[#allocation13 + $0x150] sm:$0xff]  ;;  %v743_v46 = vld [vmem:[#allocation13 + $0x38] sm:$0xff] }
  0xd6   :  { %665 = vmatpush.msrb.mxu0 %v464_v43  ;;  %705 = vmatpush.msrb.mxu2 %v465_v45  ;;  %v763_v43 = vld [vmem:[#allocation13 + $0xd8] sm:$0xff]  ;;  %v797_v45 = vld [vmem:[#allocation13 + $0x1e8] sm:$0xff] }
  0xd7   :  { %683 = vmatpush.msrb.mxu1 %v536_v48  ;;  %723 = vmatpush.msrb.mxu3 %v537_v50  ;;  %v777_v48 = vld [vmem:[#allocation13 + $0x148] sm:$0xff]  ;;  %v742_v50 = vld [vmem:[#allocation13 + $0x30] sm:$0xff] }
  0xd8   :  { %666 = vmatpush.msrb.mxu0 %v460_v47  ;;  %706 = vmatpush.msrb.mxu2 %v461_v49  ;;  %v762_v47 = vld [vmem:[#allocation13 + $0xd0] sm:$0xff]  ;;  %v796_v49 = vld [vmem:[#allocation13 + $0x1e0] sm:$0xff] }
  0xd9   :  { %684 = vmatpush.msrb.mxu1 %v532_v52  ;;  %724 = vmatpush.msrb.mxu3 %v533_v54  ;;  %v741_v52 = vld [vmem:[#allocation13 + $0x28] sm:$0xff]  ;;  %v740_v54 = vld [vmem:[#allocation13 + $0x20] sm:$0xff] }
  0xda   :  { %667 = vmatpush.msrb.mxu0 %v456_v51  ;;  %707 = vmatpush.msrb.mxu2 %v457_v53  ;;  %v761_v51 = vld [vmem:[#allocation13 + $0xc8] sm:$0xff]  ;;  %v760_v53 = vld [vmem:[#allocation13 + $0xc0] sm:$0xff] }
  0xdb   :  { %685 = vmatpush.msrb.mxu1 %v528_v56  ;;  %725 = vmatpush.msrb.mxu3 %v529_v58  ;;  %v776_v56 = vld [vmem:[#allocation13 + $0x140] sm:$0xff]  ;;  %v739_v58 = vld [vmem:[#allocation13 + $0x18] sm:$0xff] }
  0xdc   :  { %668 = vmatpush.msrb.mxu0 %v452_v55  ;;  %708 = vmatpush.msrb.mxu2 %v453_v57  ;;  %v759_v55 = vld [vmem:[#allocation13 + $0xb8] sm:$0xff] }
  0xdd   :  { %686 = vmatpush.msrb.mxu1 %v524_v60  ;;  %726 = vmatpush.msrb.mxu3 %v525_v62  ;;  %v795_v57 = vld [vmem:[#allocation13 + $0x1d8] sm:$0xff]  ;;  %v738_v62 = vld [vmem:[#allocation13 + $0x10] sm:$0xff] }
  0xde   :  { %669 = vmatpush.msrb.mxu0 %v448_v59  ;;  %709 = vmatpush.msrb.mxu2 %v449_v61  ;;  %v758_v59 = vld [vmem:[#allocation13 + $0xb0] sm:$0xff]  ;;  %v775_v60 = vld [vmem:[#allocation13 + $0x138] sm:$0xff] }
  0xdf   :  { %687 = vmatpush.msrb.mxu1 %v520_v0  ;;  %727 = vmatpush.msrb.mxu3 %v521_v2  ;;  %v794_v61 = vld [vmem:[#allocation13 + $0x1d0] sm:$0xff]  ;;  %v737_v2 = vld [vmem:[#allocation13 + $0x8] sm:$0xff] }
  0xe0   :  { %670 = vmatpush.msrb.mxu0 %v444_v63  ;;  %710 = vmatpush.msrb.mxu2 %v445_v1  ;;  %v757_v63 = vld [vmem:[#allocation13 + $0xa8] sm:$0xff]  ;;  %v774_v0 = vld [vmem:[#allocation13 + $0x130] sm:$0xff] }
  0xe1   :  { %688 = vmatpush.msrb.mxu1 %v516_v4  ;;  %728 = vmatpush.msrb.mxu3 %v517_v6  ;;  %v793_v1 = vld [vmem:[#allocation13 + $0x1c8] sm:$0xff]  ;;  %v736_v6 = vld [vmem:[#allocation13] sm:$0xff] }
  0xe2   :  { %671 = vmatpush.msrb.mxu0 %v440_v3  ;;  %711 = vmatpush.msrb.mxu2 %v441_v5  ;;  %v756_v3 = vld [vmem:[#allocation13 + $0xa0] sm:$0xff]  ;;  %v773_v4 = vld [vmem:[#allocation13 + $0x128] sm:$0xff] }
  0xe3   :  { %689 = vmatpush.msrb.mxu1 %v512_v7  ;;  %729 = vmatpush.msrb.mxu3 %v513_v8  ;;  %v792_v5 = vld [vmem:[#allocation13 + $0x1c0] sm:$0xff]  ;;  %v755_v7 = vld [vmem:[#allocation13 + $0x98] sm:$0xff] }
  0xe4   :  { %v772_v8 = vld [vmem:[#allocation13 + $0x120] sm:$0xff] }
  0xe5   :  { %690 = vmatpush.msrb.mxu1 %v508_v9  ;;  %730 = vmatpush.msrb.mxu3 %v509_v10  ;;  %v791_v9 = vld [vmem:[#allocation13 + $0x1b8] sm:$0xff]  ;;  %v754_v10 = vld [vmem:[#allocation13 + $0x90] sm:$0xff] }
  0xe7   :  { %691 = vmatpush.msrb.mxu1 %v504_v11  ;;  %731 = vmatpush.msrb.mxu3 %v505_v12  ;;  %v771_v11 = vld [vmem:[#allocation13 + $0x118] sm:$0xff]  ;;  %v790_v12 = vld [vmem:[#allocation13 + $0x1b0] sm:$0xff] }
 0x140   :  { %v375_v15 = vpop.f32.mrf.mxu0 }
 0x141   :  { %v376_v16 = vadd.f32 %v375_v15, %v354_v14  ;;  %v770_v14 = vld [vmem:[#allocation13 + $0x110] sm:$0xff]  ;;  %v789_v15 = vld [vmem:[#allocation13 + $0x1a8] sm:$0xff] }
 0x144   :  { %v395_v18 = vpop.f32.mrf.mxu1 }
 0x145   :  { %v396_v19 = vadd.f32 %v395_v18, %v376_v16  ;;  %v752_v16 = vld [vmem:[#allocation13 + $0x80] sm:$0xff] }
 0x146   :  { %v415_v22 = vpop.f32.mrf.mxu2  ;;  %v788_v18 = vld [vmem:[#allocation13 + $0x1a0] sm:$0xff] }
 0x147   :  { %592 = vmatmul.f32.vlgmr.msra.gmra.mxu0 %v396_v19  ;;  %632 = vmatmul.f32.vlgmr.msra.gmra.mxu2 %v396_v19  ;;  %v416_v23 = vadd.f32 %v415_v22, %v355_v17  ;;  %v769_v17 = vld [vmem:[#allocation13 + $0x108] sm:$0xff] }
 0x148   :  { %804 = vmatpush.msra.mxu0 %v751_v20  ;;  %844 = vmatpush.msra.mxu2 %v783_v21  ;;  %v787_v20 = vld [vmem:[#allocation13 + $0x198] sm:$0xff]  ;;  %v786_v21 = vld [vmem:[#allocation13 + $0x190] sm:$0xff]  ;;  %v785_v22 = vld [vmem:[#allocation13 + $0x188] sm:$0xff] }
 0x14a   :  { %v435_v28 = vpop.f32.mrf.mxu3  ;;  %805 = vmatpush.msra.mxu0 %v750_v24  ;;  %845 = vmatpush.msra.mxu2 %v782_v25  ;;  %v566_v24 = vld [vmem:[%s1222_s6] sm:$0xf] }
 0x14b   :  { %v436_v29 = vadd.f32 %v435_v28, %v416_v23  ;;  %v784_v23 = vld [vmem:[#allocation13 + $0x180] sm:$0xff] }
 0x14c   :  { %806 = vmatpush.msra.mxu0 %v749_v26  ;;  %846 = vmatpush.msra.mxu2 %v781_v27  ;;  %v568_v26 = vperm.slane %v566_v24, 0 }
 0x14d   :  { %612 = vmatmul.f32.vlgmr.msra.gmra.mxu1 %v436_v29  ;;  %652 = vmatmul.f32.vlgmr.msra.gmra.mxu3 %v436_v29 }
 0x14e   :  { %807 = vmatpush.msra.mxu0 %v748_v30  ;;  %824 = vmatpush.msra.mxu1 %v767_v31  ;;  %v569_v31 = vperm.slane %v566_v24, 1 }
 0x14f   :  { %672 = vmatmul.f32.vlgmr.msrb.gmra.mxu0 %v396_v19  ;;  %712 = vmatmul.f32.vlgmr.msrb.gmra.mxu2 %v396_v19  ;;  %v768_v19 = vld [vmem:[#allocation13 + $0x100] sm:$0xff] }
 0x150   :  { %808 = vmatpush.msra.mxu0 %v747_v32  ;;  %825 = vmatpush.msra.mxu1 %v766_v33  ;;  %v570_v32 = vperm.slane %v566_v24, 2 }
 0x151   :  { %847 = vmatpush.msra.mxu2 %v780_v34  ;;  %864 = vmatpush.msra.mxu3 %v799_v35 }
 0x152   :  { %809 = vmatpush.msra.mxu0 %v746_v36  ;;  %826 = vmatpush.msra.mxu1 %v765_v37 }
 0x153   :  { %848 = vmatpush.msra.mxu2 %v779_v38  ;;  %865 = vmatpush.msra.mxu3 %v798_v39 }
 0x154   :  { %810 = vmatpush.msra.mxu0 %v745_v40  ;;  %827 = vmatpush.msra.mxu1 %v764_v41  ;;  %v571_v40 = vperm.slane %v566_v24, 3 }
 0x155   :  { %692 = vmatmul.f32.vlgmr.msrb.gmra.mxu1 %v436_v29  ;;  %732 = vmatmul.f32.vlgmr.msrb.gmra.mxu3 %v436_v29 }
 0x156   :  { %811 = vmatpush.msra.mxu0 %v744_v42  ;;  %828 = vmatpush.msra.mxu1 %v763_v43 }
 0x157   :  { %849 = vmatpush.msra.mxu2 %v778_v44  ;;  %866 = vmatpush.msra.mxu3 %v797_v45  ;;  %v919_v45 = vld [vmem:[%s1224_s8] ss:$0 sm:$0xff] }
 0x158   :  { %812 = vmatpush.msra.mxu0 %v743_v46  ;;  %829 = vmatpush.msra.mxu1 %v762_v47 }
 0x159   :  { %850 = vmatpush.msra.mxu2 %v777_v48  ;;  %867 = vmatpush.msra.mxu3 %v796_v49 }
 0x15a   :  { %813 = vmatpush.msra.mxu0 %v742_v50  ;;  %830 = vmatpush.msra.mxu1 %v761_v51 }
 0x15b   :  { %851 = vmatpush.msra.mxu2 %v776_v56  ;;  %868 = vmatpush.msra.mxu3 %v795_v57 }
 0x15c   :  { %814 = vmatpush.msra.mxu0 %v741_v52  ;;  %831 = vmatpush.msra.mxu1 %v760_v53 }
 0x15d   :  { %852 = vmatpush.msra.mxu2 %v775_v60  ;;  %869 = vmatpush.msra.mxu3 %v794_v61 }
 0x15e   :  { %815 = vmatpush.msra.mxu0 %v740_v54  ;;  %832 = vmatpush.msra.mxu1 %v759_v55 }
 0x15f   :  { %853 = vmatpush.msra.mxu2 %v774_v0  ;;  %870 = vmatpush.msra.mxu3 %v793_v1 }
 0x160   :  { %816 = vmatpush.msra.mxu0 %v739_v58  ;;  %833 = vmatpush.msra.mxu1 %v758_v59 }
 0x161   :  { %854 = vmatpush.msra.mxu2 %v773_v4  ;;  %871 = vmatpush.msra.mxu3 %v792_v5 }
 0x162   :  { %817 = vmatpush.msra.mxu0 %v738_v62  ;;  %834 = vmatpush.msra.mxu1 %v757_v63 }
 0x163   :  { %855 = vmatpush.msra.mxu2 %v772_v8  ;;  %872 = vmatpush.msra.mxu3 %v791_v9 }
 0x164   :  { %818 = vmatpush.msra.mxu0 %v737_v2  ;;  %835 = vmatpush.msra.mxu1 %v756_v3 }
 0x165   :  { %856 = vmatpush.msra.mxu2 %v771_v11  ;;  %873 = vmatpush.msra.mxu3 %v790_v12 }
 0x166   :  { %819 = vmatpush.msra.mxu0 %v736_v6  ;;  %836 = vmatpush.msra.mxu1 %v755_v7 }
 0x167   :  { %857 = vmatpush.msra.mxu2 %v770_v14  ;;  %874 = vmatpush.msra.mxu3 %v789_v15 }
 0x168   :  { %837 = vmatpush.msra.mxu1 %v754_v10 }
 0x169   :  { %858 = vmatpush.msra.mxu2 %v769_v17  ;;  %875 = vmatpush.msra.mxu3 %v788_v18 }
 0x16a   :  { %838 = vmatpush.msra.mxu1 %v753_v13 }
 0x16b   :  { %859 = vmatpush.msra.mxu2 %v768_v19  ;;  %876 = vmatpush.msra.mxu3 %v787_v20 }
 0x16c   :  { %839 = vmatpush.msra.mxu1 %v752_v16 }
 0x16d   :  { %877 = vmatpush.msra.mxu3 %v786_v21 }
 0x16f   :  { %878 = vmatpush.msra.mxu3 %v785_v22 }
 0x171   :  { %879 = vmatpush.msra.mxu3 %v784_v23 }
 0x1c4   :  { %v593_v25 = vpop.f32.mrf.mxu0 }
 0x1c5   :  { %v594_v27 = vadd.f32 %v593_v25, %v568_v26 }
 0x1ca   :  { %v613_v28 = vpop.f32.mrf.mxu1  ;;  %v633_v29 = vpop.f32.mrf.mxu2 }
 0x1cb   :  { %v614_v30 = vadd.f32 %v613_v28, %v594_v27  ;;  %v634_v34 = vadd.f32 %v633_v29, %v569_v31 }
 0x1cc   :  { %v673_v33 = vpop.f32.mrf.mxu0 }
 0x1cd   :  { %820 = vmatmul.f32.vlgmr.msra.gmra.mxu0 %v614_v30  ;;  %v674_v36 = vadd.f32 %v673_v33, %v570_v32 }
 0x1d0   :  { %v653_v35 = vpop.f32.mrf.mxu3 }
 0x1d1   :  { %v654_v37 = vadd.f32 %v653_v35, %v634_v34 }
 0x1d2   :  { %v693_v38 = vpop.f32.mrf.mxu1  ;;  %v713_v41 = vpop.f32.mrf.mxu2 }
 0x1d3   :  { %v694_v39 = vadd.f32 %v693_v38, %v674_v36  ;;  %840 = vmatmul.f32.vlgmr.msra.gmra.mxu1 %v654_v37  ;;  %v714_v42 = vadd.f32 %v713_v41, %v571_v40 }
 0x1d5   :  { %860 = vmatmul.f32.vlgmr.msra.gmra.mxu2 %v694_v39 }
 0x1d8   :  { %v733_v43 = vpop.f32.mrf.mxu3 }
 0x1d9   :  { %v734_v44 = vadd.f32 %v733_v43, %v714_v42 }
 0x1db   :  { %880 = vmatmul.f32.vlgmr.msra.gmra.mxu3 %v734_v44 }
 0x24a   :  { %v821_v46 = vpop.f32.mrf.mxu0 }
 0x24b   :  { %v822_v48 = vadd.f32 %v919_v45, %v821_v46 }
 0x250   :  { %v841_v47 = vpop.f32.mrf.mxu1 }
 0x251   :  { %v842_v50 = vadd.f32 %v841_v47, %v822_v48 }
 0x258   :  { %v861_v49 = vpop.f32.mrf.mxu2 }
 0x259   :  { %v862_v51 = vadd.f32 %v861_v49, %v842_v50 }
 0x25e   :  { %v881_v52 = vpop.f32.mrf.mxu3 }
 0x25f   :  { %v882_v53 = vadd.f32 %v881_v52, %v862_v51 }
 0x261   :  { %884 = vst [vmem:[#allocation14] sm:$0xff] %v882_v53 }
 0x262   :  { %895 = dma.vmem_to_hbm [thread:$0]  %s891_s25, 128, %s893_s27, [#allocation4]  }
 0x263   :  { %1120 = dma.done.wait [#allocation4], 128  }
 0x264   :  { %1121 = vsyncadd [#allocation4], 4294967168 }
 0x265   :  { %900 = vsyncpa [#allocation3], 1 }
 0x266   :  { %901 = vsyncpa [#allocation6], 1 }
 0x267   :  { %902 = vsyncpa [#allocation9], 1 }
 0x268   :  { %903 = vsyncpa [#allocation12], 1 }
 0x269   :  { %904 = vsyncpa [#allocation4], 1 }

</bundles_post_ra>
